<compile_context>
chip_gen: v5e
topology: v5e:2x2
jax: 0.10.0
libtpu: 0.0.40
codegen_flags: <defaults>
</compile_context>

<pallas_src>
import jax
import jax.numpy as jnp
from jax.experimental import pallas as pl
from jax.experimental.pallas import tpu as pltpu

_LANES = 1024            # lane-dense width (multiple of 128 -> unmasked vst)
_MAX_BLOCK_ROWS = 1024   # (1024,1024) f32 tile = 4 MiB; in+out double-buffered = 16 MiB
_SMALL_N = 32_768        # below this, fused XLA FMA beats kernel-launch overhead


def _fma_kernel(w_ref, b_ref, x_ref, o_ref):
    # w_ref/b_ref: (1,1) f32 scalars in SMEM; x_ref/o_ref: (block_rows, cols) VMEM tiles.
    w = w_ref[0, 0]
    b = b_ref[0, 0]
    o_ref[...] = (x_ref[...].astype(jnp.float32) * w + b).astype(o_ref.dtype)


def _round_up(a: int, m: int) -> int:
    return ((a + m - 1) // m) * m


def _choose_layout(n: int):
    """Lane-dense (rows, cols) view, row-block size and grid size for n elements."""
    cols = _LANES if n >= _LANES else 128
    rows = pl.cdiv(n, cols)
    if rows <= _MAX_BLOCK_ROWS:
        return rows, cols, rows, 1                        # single block == whole array
    n_blocks = pl.cdiv(rows, _MAX_BLOCK_ROWS)
    if n_blocks % 2:
        n_blocks += 1                                     # even tile count balances v7x's 2 TCs
    block_rows = _round_up(pl.cdiv(rows, n_blocks), 8)    # sublane-aligned block
    return rows, cols, block_rows, pl.cdiv(rows, block_rows)


def linear_regression_forward(x: jax.Array, weight: jax.Array, bias: jax.Array,
                              *, force_pallas: bool = False) -> jax.Array:
    """y = x @ weight.T + bias for weight (1,1), bias (1,), x (N, 1)."""
    n, in_features = x.shape
    assert in_features == 1 and weight.shape == (1, 1) and bias.shape == (1,)
    out_dtype = x.dtype

    if n < _SMALL_N and not force_pallas:
        # Launch + plumbing overhead dwarfs <1 us of data movement; let XLA fuse it.
        w = weight[0, 0].astype(jnp.float32)
        b = bias[0].astype(jnp.float32)
        return (x.astype(jnp.float32) * w + b).astype(out_dtype)

    w_smem = weight.reshape(1, 1).astype(jnp.float32)
    b_smem = bias.reshape(1, 1).astype(jnp.float32)

    rows, cols, block_rows, grid = _choose_layout(n)
    total = rows * cols

    flat = x.reshape(-1)                       # metadata-only (contiguous (N,1))
    if total != n:                             # ragged: pad <= cols-1 (<1024) elements
        flat = jnp.pad(flat, (0, total - n))
    x2d = flat.reshape(rows, cols)             # metadata-only when total == n

    out2d = pl.pallas_call(
        _fma_kernel,
        out_shape=jax.ShapeDtypeStruct((rows, cols), out_dtype),
        grid=(grid,),
        in_specs=[
            pl.BlockSpec(memory_space=pltpu.SMEM),               # weight scalar
            pl.BlockSpec(memory_space=pltpu.SMEM),               # bias scalar
            pl.BlockSpec((block_rows, cols), lambda i: (i, 0)),   # lane-dense input tile
        ],
        out_specs=pl.BlockSpec((block_rows, cols), lambda i: (i, 0)),
        compiler_params=pltpu.CompilerParams(
            dimension_semantics=("parallel",),     # shard tiles across v7x's 2 TCs
            vmem_limit_bytes=32 * 1024 * 1024,     # headroom over v5e's 16 MiB scoped default
        ),
    )(w_smem, b_smem, x2d)

    out_flat = out2d.reshape(-1)               # metadata-only
    if total != n:
        out_flat = out_flat[:n]
    return out_flat.reshape(n, 1)


def _reference(x, weight, bias):
    return (x.astype(jnp.float32) @ weight.T.astype(jnp.float32)
            + bias.astype(jnp.float32)).astype(x.dtype)


def _check(n: int, key, weight, bias, *, force_pallas: bool = False) -> None:
    x = jax.random.normal(key, (n, 1), jnp.float32)
    y = linear_regression_forward(x, weight, bias, force_pallas=force_pallas)
    jax.block_until_ready(y)
    y_ref = _reference(x, weight, bias)
    assert y.shape == (n, 1)
    assert bool(jnp.allclose(y, y_ref, atol=1e-5, rtol=1e-5)), f"mismatch vs reference at n={n}"


if __name__ == "__main__":
    key = jax.random.PRNGKey(0)
    kw, kb, k0, k1, k2, k3 = jax.random.split(key, 6)
    weight = jax.random.uniform(kw, (1, 1), jnp.float32, minval=-1.0, maxval=1.0)
    bias = jax.random.uniform(kb, (1,), jnp.float32, minval=-1.0, maxval=1.0)

    # Small batch (typical use of this module); Pallas forced so the kernel itself
    # runs at a small shape (single partial (1,128) tile path).
    _check(16, k0, weight, bias, force_pallas=True)
    # Same small batch through the default dispatch (fused XLA FMA path).
    _check(16, k1, weight, bias)
    # Copy-free path: N is an exact multiple of the 1024-lane width (no pad/slice).
    _check(64 * 1024, k2, weight, bias)
    # Ragged multi-block path: even tile count, masked partial last block, <1K pad.
    _check(1_050_000, k3, weight, bias)

    print("KERNEL_OK")
</pallas_src>

<mosaic_0001>
module attributes {stable_mosaic.version = 11 : i64} {
  func.func @_fma_kernel(%arg0: i32, %arg1: memref<1x1xf32, #tpu.memory_space<smem>>, %arg2: memref<1x1xf32, #tpu.memory_space<smem>>, %arg3: memref<1x128xf32, #tpu.memory_space<vmem>>, %arg4: memref<1x128xf32, #tpu.memory_space<vmem>>) attributes {dimension_semantics = [#tpu.dimension_semantics<parallel>], iteration_bounds = array<i64: 1>, scalar_prefetch = 0 : i64, scratch_operands = 0 : i64, tpu.core_type = #tpu.core_type<tc>, window_params = [{transform_indices = @transform_0, window_bounds = array<i64: 1, 1>}, {transform_indices = @transform_1, window_bounds = array<i64: 1, 1>}, {transform_indices = @transform_2, window_bounds = array<i64: 1, 128>}, {transform_indices = @transform_3, window_bounds = array<i64: 1, 128>}]} {
    %c0 = arith.constant 0 : index
    %c0_0 = arith.constant 0 : index
    %0 = memref.load %arg1[%c0, %c0_0] : memref<1x1xf32, #tpu.memory_space<smem>>
    %c0_1 = arith.constant 0 : index
    %c0_2 = arith.constant 0 : index
    %1 = memref.load %arg2[%c0_1, %c0_2] : memref<1x1xf32, #tpu.memory_space<smem>>
    %c0_3 = arith.constant 0 : index
    %c0_4 = arith.constant 0 : index
    %2 = vector.load %arg3[%c0_3, %c0_4] : memref<1x128xf32, #tpu.memory_space<vmem>>, vector<1x128xf32>
    %3 = vector.broadcast %0 : f32 to vector<1x128xf32>
    %4 = arith.mulf %2, %3 : vector<1x128xf32>
    %5 = vector.broadcast %1 : f32 to vector<1x128xf32>
    %6 = arith.addf %4, %5 : vector<1x128xf32>
    %c0_5 = arith.constant 0 : index
    %c0_6 = arith.constant 0 : index
    %7 = vector.load %arg4[%c0_5, %c0_6] : memref<1x128xf32, #tpu.memory_space<vmem>>, vector<1x128xf32>
    tpu.vector_store %arg4[%c0_5, %c0_6], %6 {strides = array<i32>} : memref<1x128xf32, #tpu.memory_space<vmem>>, vector<1x128xf32>,
    return
  }
  func.func @transform_0(%arg0: i32) -> (i32, i32) {
    %c0_i32 = arith.constant 0 : i32
    %c0_i32_0 = arith.constant 0 : i32
    %c0_i32_1 = arith.constant 0 : i32
    return %c0_i32, %c0_i32_0 : i32, i32
  }
  func.func @transform_1(%arg0: i32) -> (i32, i32) {
    %c0_i32 = arith.constant 0 : i32
    %c0_i32_0 = arith.constant 0 : i32
    %c0_i32_1 = arith.constant 0 : i32
    return %c0_i32, %c0_i32_0 : i32, i32
  }
  func.func @transform_2(%arg0: i32) -> (i32, i32) {
    %c0_i32 = arith.constant 0 : i32
    %c0_i32_0 = arith.constant 0 : i32
    return %arg0, %c0_i32 : i32, i32
  }
  func.func @transform_3(%arg0: i32) -> (i32, i32) {
    %c0_i32 = arith.constant 0 : i32
    %c0_i32_0 = arith.constant 0 : i32
    return %arg0, %c0_i32 : i32, i32
  }
}

</mosaic_0001>

<bundles_post_ra>
// kernel: tpu_custom_call.1
= control target key start
LH: loop header
LB: loop body
LE: loop exit
PB: predicated region body
PF: predicated region fallthrough
CT: control target
= control target key end

     0   :  { %s101_s0 = inlined_call_operand.<no memory space> [shape: f32[1,1], index: 0, kind: input, shape index: {}]   ;;  %s102_s1 = inlined_call_operand.<no memory space> [shape: f32[1,1], index: 1, kind: input, shape index: {}]   ;;  %s103_s2 = inlined_call_operand.vmem [shape: f32[1,128], index: 2, kind: input, shape index: {}]   ;;  %s104_s3 = inlined_call_operand.hbm [shape: f32[1,128], index: 3, kind: output, shape index: {}]  }
   0x1   :  { %v19_v0 = vld [vmem:[%s103_s2] sm:$0x1]  ;;  %v20_v1 = vstv %s101_s0  ;;  %v22_v2 = vstv %s102_s1 }
   0x2   :  { %10 = vsyncpa [#allocation5], 0  ;;  %s32_s20 = sshll.u32 %s104_s3, 4  ;;  %v21_v3 = vmul.f32 %v20_v1, %v19_v0  ;;  %s68_s21 = smov [#allocation4]   ;;  %s33_s20 = int_to_ptr.hbm [resolvable:$true] %s32_s20 }
   0x3   :  { %s30_s22 = sshll.u32 %s68_s21, 4  ;;  %s31_s22 = int_to_ptr.vmem [resolvable:$true] %s30_s22 }
   0x4   :  { %v23_v4 = vadd.f32 %v22_v2, %v21_v3 }
   0x6   :  { %24 = vst [vmem:[#allocation4] sm:$0x1] %v23_v4 }
   0x7   :  { %35 = dma.vmem_to_hbm [thread:$0]  %s31_s22, 16, %s33_s20, [#allocation5]  }
   0x8   :  { %66 = dma.done.wait [#allocation5], 16  }
   0x9   :  { %67 = vsyncadd [#allocation5], 4294967280 }
   0xa   :  { %40 = vsyncpa [#allocation5], 1 }

</bundles_post_ra>
